<compile_context>
chip_gen: v7x
topology: tpu7x:2x2x1
jax: 0.10.0
libtpu: 0.0.40
codegen_flags: <defaults>
</compile_context>

<pallas_src>
import jax
import jax.numpy as jnp
from jax.experimental import pallas as pl
from jax.experimental.pallas import tpu as pltpu


def _disc_kernel(x_ref, w1_ref, w2_ref, b2_ref, w3_ref, b3_ref, out_ref):
    # x_ref : (TB, S, V) VMEM      w1_ref: (V, E) VMEM
    # w2_ref: (1, E) VMEM          b2_ref: (1, 1) SMEM
    # w3_ref: (1, S) VMEM          b3_ref: (1, 1) SMEM
    # out_ref: (1, 1, TB) VMEM
    tb, S, V = x_ref.shape
    E = w1_ref.shape[1]

    # Linear(V -> E, bias=False) on the MXU with M = TB*S rows, f32 accumulate.
    x2d = x_ref[...].reshape(tb * S, V)
    h = jnp.dot(x2d, w1_ref[...], preferred_element_type=jnp.float32)   # (TB*S, E)
    h = jnp.where(h > 0, h, 0.2 * h)                                    # LeakyReLU(0.2)

    # Linear(E -> 1, bias=True) as VPU multiply + cross-lane (XLU) reduce,
    # producing a lane-dense (TB, S) intermediate (no lane-width-1 tensors).
    t = jnp.sum(h.reshape(tb, S, E) * w2_ref[...], axis=-1)             # (TB, S)
    t = t + b2_ref[0, 0]
    t = jnp.where(t > 0, t, 0.2 * t)                                    # LeakyReLU(0.2)

    # permute(0,2,1) is implicit in the (TB, S) layout.
    # Linear(S -> 1, bias=True) + Sigmoid, again as multiply + reduce.
    y = jnp.sum(t * w3_ref[...], axis=-1, keepdims=True)                # (TB, 1)
    y = y + b3_ref[0, 0]
    out_ref[...] = jax.nn.sigmoid(y).reshape(1, 1, tb)                  # lane-dense store


def _choose_block_b(B, S, V, budget_bytes=8 << 20):
    """Batches per grid step so a double-buffered x block stays ~<=16 MiB."""
    rows = budget_bytes // (S * V * 4)
    tb = max(1, min(B, rows))
    if tb >= 8:
        tb -= tb % 8
    return int(tb)


def discriminator_forward(x, w1, w2_row, b2, w3_row, b3, *, block_b=None):
    """x: (B, S, V) float32. Returns (B,) float32 probabilities."""
    B, S, V = x.shape
    E = w1.shape[1]

    if block_b is None:
        block_b = _choose_block_b(B, S, V)
    tb = int(min(block_b, B))
    num_tiles = pl.cdiv(B, tb)
    Bp = num_tiles * tb
    if Bp != B:
        # Pad the batch so the grid tiles evenly; padded rows are discarded below.
        x = jnp.pad(x, ((0, Bp - B), (0, 0), (0, 0)))

    out = pl.pallas_call(
        _disc_kernel,
        out_shape=jax.ShapeDtypeStruct((num_tiles, 1, tb), jnp.float32),
        grid=(num_tiles,),
        in_specs=[
            pl.BlockSpec((tb, S, V), lambda i: (i, 0, 0)),                 # x tile (pipelined)
            pl.BlockSpec((V, E), lambda i: (0, 0)),                        # w1, resident
            pl.BlockSpec((1, E), lambda i: (0, 0)),                        # w2 row, resident
            pl.BlockSpec(memory_space=pltpu.MemorySpace.SMEM),             # b2 scalar
            pl.BlockSpec((1, S), lambda i: (0, 0)),                        # w3 row, resident
            pl.BlockSpec(memory_space=pltpu.MemorySpace.SMEM),             # b3 scalar
        ],
        out_specs=pl.BlockSpec((1, 1, tb), lambda i: (i, 0, 0)),           # lane-dense output
        compiler_params=pltpu.CompilerParams(
            dimension_semantics=("parallel",),
            vmem_limit_bytes=32 * 1024 * 1024,
        ),
    )(x, w1, w2_row, b2, w3_row, b3)

    return out.reshape(Bp)[:B]


def init_params(key, vocab_size, seq_len, embedding_size):
    """Deterministic synthetic init (PyTorch-style uniform fan-in bounds).

    w1      : (V, E)   -- Linear(V, E, bias=False) weight, pre-transposed
    w2_row  : (1, E)   -- Linear(E, 1) weight (native PyTorch layout)
    b2      : (1, 1)
    w3_row  : (1, S)   -- Linear(S, 1) weight (native PyTorch layout)
    b3      : (1, 1)
    """
    k1, k2, k3, k4, k5 = jax.random.split(key, 5)
    b_v = 1.0 / float(vocab_size) ** 0.5
    b_e = 1.0 / float(embedding_size) ** 0.5
    b_s = 1.0 / float(seq_len) ** 0.5
    w1 = jax.random.uniform(k1, (vocab_size, embedding_size), jnp.float32, -b_v, b_v)
    w2_row = jax.random.uniform(k2, (1, embedding_size), jnp.float32, -b_e, b_e)
    b2 = jax.random.uniform(k3, (1, 1), jnp.float32, -b_e, b_e)
    w3_row = jax.random.uniform(k4, (1, seq_len), jnp.float32, -b_s, b_s)
    b3 = jax.random.uniform(k5, (1, 1), jnp.float32, -b_s, b_s)
    return w1, w2_row, b2, w3_row, b3


def reference_forward(x, w1, w2_row, b2, w3_row, b3):
    """Plain-JAX reference mirroring the PyTorch module."""
    h = x @ w1                                   # (B, S, E)
    h = jnp.where(h > 0, h, 0.2 * h)
    t = h @ w2_row.T + b2[0, 0]                  # (B, S, 1)
    t = jnp.where(t > 0, t, 0.2 * t)
    t = jnp.transpose(t, (0, 2, 1))              # (B, 1, S)
    y = t @ w3_row.T + b3[0, 0]                  # (B, 1, 1)
    return jax.nn.sigmoid(y).reshape(-1)


if __name__ == "__main__":
    # Small shapes consistent with the module's forward signature.
    batch_size = 6
    seq_len = 8
    vocab_size = 32
    embedding_size = 16

    key = jax.random.PRNGKey(0)
    kx, kp = jax.random.split(key)

    # Semi-one-hot input from a "generator": softmax over vocab per position.
    logits = jax.random.normal(kx, (batch_size, seq_len, vocab_size), jnp.float32)
    x = jax.nn.softmax(logits, axis=-1)

    w1, w2_row, b2, w3_row, b3 = init_params(kp, vocab_size, seq_len, embedding_size)

    # block_b=4 exercises the multi-tile grid path (grid=2) with batch padding.
    out = discriminator_forward(x, w1, w2_row, b2, w3_row, b3, block_b=4)
    jax.block_until_ready(out)

    ref = reference_forward(x, w1, w2_row, b2, w3_row, b3)
    assert out.shape == (batch_size,)
    assert jnp.allclose(out, ref, atol=1e-5, rtol=1e-5), (out, ref)

    print("KERNEL_OK")
</pallas_src>

<mosaic_0001>
module attributes {stable_mosaic.version = 11 : i64} {
  func.func @_disc_kernel(%arg0: i32, %arg1: memref<4x8x32xf32, #tpu.memory_space<vmem>>, %arg2: memref<32x16xf32, #tpu.memory_space<vmem>>, %arg3: memref<1x16xf32, #tpu.memory_space<vmem>>, %arg4: memref<1x1xf32, #tpu.memory_space<smem>>, %arg5: memref<1x8xf32, #tpu.memory_space<vmem>>, %arg6: memref<1x1xf32, #tpu.memory_space<smem>>, %arg7: memref<1x1x4xf32, #tpu.memory_space<vmem>>) attributes {dimension_semantics = [#tpu.dimension_semantics<parallel>], iteration_bounds = array<i64: 2>, scalar_prefetch = 0 : i64, scratch_operands = 0 : i64, tpu.core_type = #tpu.core_type<tc>, window_params = [{transform_indices = @transform_0, window_bounds = array<i64: 4, 8, 32>}, {pipeline_mode = #tpu.pipeline_mode<synchronous>, transform_indices = @transform_1, window_bounds = array<i64: 32, 16>}, {pipeline_mode = #tpu.pipeline_mode<synchronous>, transform_indices = @transform_2, window_bounds = array<i64: 1, 16>}, {transform_indices = @transform_3, window_bounds = array<i64: 1, 1>}, {pipeline_mode = #tpu.pipeline_mode<synchronous>, transform_indices = @transform_4, window_bounds = array<i64: 1, 8>}, {transform_indices = @transform_5, window_bounds = array<i64: 1, 1>}, {transform_indices = @transform_6, window_bounds = array<i64: 1, 1, 4>}]} {
    %c0 = arith.constant 0 : index
    %c0_0 = arith.constant 0 : index
    %c0_1 = arith.constant 0 : index
    %0 = vector.load %arg1[%c0, %c0_0, %c0_1] : memref<4x8x32xf32, #tpu.memory_space<vmem>>, vector<4x8x32xf32>
    %1 = vector.shape_cast %0 : vector<4x8x32xf32> to vector<32x32xf32>
    %c0_2 = arith.constant 0 : index
    %c0_3 = arith.constant 0 : index
    %2 = vector.load %arg2[%c0_2, %c0_3] : memref<32x16xf32, #tpu.memory_space<vmem>>, vector<32x16xf32>
    %cst = arith.constant dense<0.000000e+00> : vector<32x16xf32>
    %3 = tpu.matmul %1, %2, %cst {dimension_numbers = #tpu.dot_dimension_numbers<[1], [0], [0], [1], [0, 0, 1, 1], [], []>} : vector<32x32xf32>, vector<32x16xf32>, vector<32x16xf32> -> vector<32x16xf32>
    %cst_4 = arith.constant 0.000000e+00 : f32
    %4 = vector.broadcast %cst_4 : f32 to vector<32x16xf32>
    %5 = arith.cmpf ogt, %3, %4 : vector<32x16xf32>
    %cst_5 = arith.constant 2.000000e-01 : f32
    %6 = vector.broadcast %cst_5 : f32 to vector<32x16xf32>
    %7 = arith.mulf %6, %3 : vector<32x16xf32>
    %8 = arith.select %5, %3, %7 : vector<32x16xi1>, vector<32x16xf32>
    %9 = vector.shape_cast %8 : vector<32x16xf32> to vector<4x8x16xf32>
    %c0_6 = arith.constant 0 : index
    %c0_7 = arith.constant 0 : index
    %10 = vector.load %arg3[%c0_6, %c0_7] : memref<1x16xf32, #tpu.memory_space<vmem>>, vector<1x16xf32>
    %11 = vector.shape_cast %10 : vector<1x16xf32> to vector<1x1x16xf32>
    %12 = vector.broadcast %11 : vector<1x1x16xf32> to vector<4x8x16xf32>
    %13 = arith.mulf %9, %12 : vector<4x8x16xf32>
    %cst_8 = arith.constant dense<0.000000e+00> : vector<4x8xf32>
    %14 = vector.multi_reduction <add>, %13, %cst_8 [2] : vector<4x8x16xf32> to vector<4x8xf32>
    %c0_9 = arith.constant 0 : index
    %c0_10 = arith.constant 0 : index
    %15 = memref.load %arg4[%c0_9, %c0_10] : memref<1x1xf32, #tpu.memory_space<smem>>
    %16 = vector.broadcast %15 : f32 to vector<4x8xf32>
    %17 = arith.addf %14, %16 : vector<4x8xf32>
    %cst_11 = arith.constant 0.000000e+00 : f32
    %18 = vector.broadcast %cst_11 : f32 to vector<4x8xf32>
    %19 = arith.cmpf ogt, %17, %18 : vector<4x8xf32>
    %cst_12 = arith.constant 2.000000e-01 : f32
    %20 = vector.broadcast %cst_12 : f32 to vector<4x8xf32>
    %21 = arith.mulf %20, %17 : vector<4x8xf32>
    %22 = arith.select %19, %17, %21 : vector<4x8xi1>, vector<4x8xf32>
    %c0_13 = arith.constant 0 : index
    %c0_14 = arith.constant 0 : index
    %23 = vector.load %arg5[%c0_13, %c0_14] : memref<1x8xf32, #tpu.memory_space<vmem>>, vector<1x8xf32>
    %24 = vector.broadcast %23 : vector<1x8xf32> to vector<4x8xf32>
    %25 = arith.mulf %22, %24 : vector<4x8xf32>
    %cst_15 = arith.constant dense<0.000000e+00> : vector<4xf32>
    %26 = vector.multi_reduction <add>, %25, %cst_15 [1] : vector<4x8xf32> to vector<4xf32>
    %27 = vector.shape_cast %26 : vector<4xf32> to vector<4x1xf32>
    %c0_16 = arith.constant 0 : index
    %c0_17 = arith.constant 0 : index
    %28 = memref.load %arg6[%c0_16, %c0_17] : memref<1x1xf32, #tpu.memory_space<smem>>
    %29 = vector.broadcast %28 : f32 to vector<4x1xf32>
    %30 = arith.addf %27, %29 : vector<4x1xf32>
    %31 = arith.negf %30 : vector<4x1xf32>
    %32 = math.exp %31 : vector<4x1xf32>
    %cst_18 = arith.constant 1.000000e+00 : f32
    %33 = vector.broadcast %cst_18 : f32 to vector<4x1xf32>
    %34 = arith.addf %33, %32 : vector<4x1xf32>
    %35 = arith.divf %33, %34 : vector<4x1xf32>
    %36 = vector.shape_cast %35 : vector<4x1xf32> to vector<1x1x4xf32>
    %c0_19 = arith.constant 0 : index
    %c0_20 = arith.constant 0 : index
    %c0_21 = arith.constant 0 : index
    %37 = vector.load %arg7[%c0_19, %c0_20, %c0_21] : memref<1x1x4xf32, #tpu.memory_space<vmem>>, vector<1x1x4xf32>
    tpu.vector_store %arg7[%c0_19, %c0_20, %c0_21], %36 {strides = array<i32>} : memref<1x1x4xf32, #tpu.memory_space<vmem>>, vector<1x1x4xf32>,
    return
  }
  func.func @transform_0(%arg0: i32) -> (i32, i32, i32) {
    %c0_i32 = arith.constant 0 : i32
    %c0_i32_0 = arith.constant 0 : i32
    %c0_i32_1 = arith.constant 0 : i32
    return %arg0, %c0_i32, %c0_i32_0 : i32, i32, i32
  }
  func.func @transform_1(%arg0: i32) -> (i32, i32) {
    %c0_i32 = arith.constant 0 : i32
    %c0_i32_0 = arith.constant 0 : i32
    %c0_i32_1 = arith.constant 0 : i32
    return %c0_i32, %c0_i32_0 : i32, i32
  }
  func.func @transform_2(%arg0: i32) -> (i32, i32) {
    %c0_i32 = arith.constant 0 : i32
    %c0_i32_0 = arith.constant 0 : i32
    %c0_i32_1 = arith.constant 0 : i32
    return %c0_i32, %c0_i32_0 : i32, i32
  }
  func.func @transform_3(%arg0: i32) -> (i32, i32) {
    %c0_i32 = arith.constant 0 : i32
    %c0_i32_0 = arith.constant 0 : i32
    %c0_i32_1 = arith.constant 0 : i32
    return %c0_i32, %c0_i32_0 : i32, i32
  }
  func.func @transform_4(%arg0: i32) -> (i32, i32) {
    %c0_i32 = arith.constant 0 : i32
    %c0_i32_0 = arith.constant 0 : i32
    %c0_i32_1 = arith.constant 0 : i32
    return %c0_i32, %c0_i32_0 : i32, i32
  }
  func.func @transform_5(%arg0: i32) -> (i32, i32) {
    %c0_i32 = arith.constant 0 : i32
    %c0_i32_0 = arith.constant 0 : i32
    %c0_i32_1 = arith.constant 0 : i32
    return %c0_i32, %c0_i32_0 : i32, i32
  }
  func.func @transform_6(%arg0: i32) -> (i32, i32, i32) {
    %c0_i32 = arith.constant 0 : i32
    %c0_i32_0 = arith.constant 0 : i32
    %c0_i32_1 = arith.constant 0 : i32
    return %arg0, %c0_i32, %c0_i32_0 : i32, i32, i32
  }
}

</mosaic_0001>

<bundles_post_ra>
// kernel: tpu_custom_call.1
= control target key start
LH: loop header
LB: loop body
LE: loop exit
PB: predicated region body
PF: predicated region fallthrough
CT: control target
= control target key end

     0   :  { %s1022_s0 = inlined_call_operand.hbm [shape: f32[8,8,32], index: 0, kind: input, shape index: {}]   ;;  %s1023_s1 = inlined_call_operand.vmem [shape: f32[32,16], index: 1, kind: input, shape index: {}]   ;;  %s1024_s2 = inlined_call_operand.vmem [shape: f32[1,16], index: 2, kind: input, shape index: {}]   ;;  %s1025_s3 = inlined_call_operand.<no memory space> [shape: f32[1,1], index: 3, kind: input, shape index: {}]   ;;  %s1026_s4 = inlined_call_operand.vmem [shape: f32[1,8], index: 4, kind: input, shape index: {}]   ;;  %s1027_s5 = inlined_call_operand.<no memory space> [shape: f32[1,1], index: 5, kind: input, shape index: {}]   ;;  %s1028_s6 = inlined_call_operand.hbm [shape: f32[2,1,4], index: 6, kind: output, shape index: {}]  }
   0x1   :  { %11 = sst [smem:[#allocation2]] %s1025_s3 }
   0x2   :  { %12 = sst [smem:[#allocation3]] %s1027_s5 }
   0x3   :  { %13 = vsyncpa [#allocation5], 0 }
   0x4   :  { %15 = vsyncpa [#allocation5 + $0x1], 0 }
   0x5   :  { %16 = vsyncpa [#allocation6], 0 }
   0x6   :  { %18 = vsyncpa [#allocation6 + $0x1], 0  ;;  %s839_s25 = smov 0   ;;  %s841_s26 = smov 0  }
   0x7   :  { %s843_s27 = smov 0   ;;  %s845_s28 = smov 0  }
   0x8 LB: > { %s860_s3 = sadd.s32 4294967295, %s791_s28   ;;  %s587_s5 = sadd.s32 4294967294, %s791_s28   ;;  %s791_s28 = sphi %s845_s28, %s1041_s28   ;;  %s787_s27 = sphi %s843_s27, %s1040_s27   ;;  %s783_s26 = sphi %s841_s26, %s1039_s26   ;;  %s779_s25 = sphi %s839_s25, %s1038_s25  }
   0x9   : > { %s864_s29 = sadd.s32 1, %s791_s28   ;;  %s31_s30 = sadd.s32 1, %s787_s27 }
   0xa   : > { %s28_s7 = ssub.s32 %s791_s28, %s864_s29  ;;  %p38_p0 = scmp.ne.s32.totalorder %s787_s27, %s783_s26 }
   0xb   : > { %p29_p1 = scmp.eq.s32.totalorder %s28_s7, 0  ;;  %p39_p2 = scmp.eq.s32.totalorder %s791_s28, 0 }
   0xc   : > { %p44_p3 = scmp.ne.s32.totalorder %s783_s26, %s779_s25  ;;  %p45_p4 = scmp.eq.s32.totalorder %s860_s3, 0 }
   0xd   : > { %s876_s8 = scalar_select %p29_p1, %s787_s27, %s31_s30  }
   0xe   : > { %p878_p5 = por %p39_p2, %p38_p0  ;;  %p882_p6 = por %p45_p4, %p44_p3 }
   0xf   : > { %p173_p7 = scmp.eq.s32.totalorder %s860_s3, 1  ;;  %p179_p8 = scmp.eq.s32.totalorder %s587_s5, 1 }
  0x10   : > { %p652_p10 = scmp.lt.s32.totalorder %s791_s28, 2  ;;  %s214_s13 = sand.u32 1, %s787_s27  }
  0x11   : > { %p889_p11 = por %p173_p7, %p38_p0  ;;  %p893_p12 = por %p179_p8, %p44_p3 }
  0x12   : > { %s605_s14 = sshll.u32 %s791_s28, 9  ;;  %s590_s15 = sshll.u32 %s214_s13, 5 }
  0x13   : > { %s1032_s11 = scalar_select %p889_p11, 1, 0 }
  0x14   : > { %s1033_s12 = scalar_select %p893_p12, 1, 0 }
  0x15   : > { %s902_s18 = scalar_lea.hbm %s1022_s0, %s605_s14  ;;  %s218_s19 = scalar_lea.vmem [#allocation4], %s590_s15 }
  0x16   : > { %s225_s20 = sshll.u32 %s218_s19, 4  ;;  %p906_p13 = pnand %p652_p10, %p878_p5  ;;  %s910_s20 = int_to_ptr.vmem [resolvable:$true] %s225_s20 }
  0x17   : > { %s912_s22 = scalar_lea.sflag [#allocation5], %s214_s13  ;;  %s695_s23 = scalar_lea.hbm %s902_s18, 512 }
  0x18   : > { %p696_p0 = scmp.ne.s32.totalorder %s902_s18, %s695_s23  ;;  %p697_p1 = pneg %p906_p13 }
  0x19   : > { %s700_s30 = scalar_lea.hbm %s1022_s0, 1024  ;;  %p701_p4 = scmp.lt.u32.totalorder %s902_s18, %s1022_s0 }
  0x1a   : > { %p698_p2 = pnand %p697_p1, %p696_p0  ;;  %p702_p5 = scmp.lt.u32.totalorder %s700_s30, %s695_s23 }
  0x1b   : > { %p704_p8 = scmp.lt.u32.totalorder %s695_s23, %s902_s18 }
  0x1c   : > { %p699_p3 = pneg %p698_p2  ;;  %p703_p7 = por %p702_p5, %p701_p4 }
  0x1e   : > { %p705_p10 = por %p704_p8, %p703_p7 }
  0x20   : > { %p706_p9 = pnand %p705_p10, %p699_p3 }
  0x22   : > { %709 = shalt.err (!%p706_p9)
}
  0x23   : > { %s710_s13 = scalar_lea.vmem %s910_s20, 512  ;;  %s793_s14 = smov [#allocation4]  }
  0x24   : > { %p711_p0 = scmp.ne.s32.totalorder %s910_s20, %s710_s13  ;;  %s715_s15 = sshll.u32 %s793_s14, 4  ;;  %s716_s15 = int_to_ptr.vmem [resolvable:$false] %s715_s15 }
  0x25   : > { %s717_s16 = scalar_lea.vmem %s716_s15, 1024  ;;  %p718_p11 = scmp.lt.s32.totalorder %s910_s20, %s716_s15 }
  0x26   : > { %p713_p2 = pnand %p711_p0, %p697_p1  ;;  %p719_p4 = scmp.lt.s32.totalorder %s717_s16, %s710_s13 }
  0x28   : > { %p714_p12 = pneg %p713_p2  ;;  %p720_p5 = por %p719_p4, %p718_p11 }
  0x2a   : > { %p721_p7 = pnand %p720_p5, %p714_p12 }
  0x2c   : > { %724 = shalt.err (!%p721_p7)
}
  0x2d   : > { %s794_s17 = smov 128   ;;  %s795_s19 = smov 8  }
  0x2e   : > { %647 = dma.hbm_to_vmem [thread:$0]  (!%p906_p13), %s902_s18, 512, %s910_s20, %s912_s22, %s794_s17, %s794_s17, %s795_s19  }
  0x2f   : > { %p593_p9 = scmp.ge.s32.totalorder %s791_s28, 1  ;;  %p233_p1 = scmp.lt.s32.totalorder %s791_s28, 3 }
  0x31   : > { %p234_p3 = pnand %p593_p9, %p233_p1 }
  0x32   : > { %s943_s23 = sand.u32 (!%p234_p3), 1, %s783_s26  }
  0x33   : > { %237 = sbr.rel (%p234_p3) target bundleno = 767 (0x2ff), region = 44  ;;  %s594_s24 = sshll.u32 (!%p234_p3), %s943_s23, 5 }
  0x34   : > { %s240_s5 = scalar_lea.sflag (!%p234_p3), [#allocation5], %s943_s23  ;;  %s243_s30 = scalar_lea.vmem (!%p234_p3), [#allocation4], %s594_s24 }
  0x3a   : > { %770 = dma.done.wait (%p882_p6), %s240_s5, 512  }
  0x3b   : > { %772 = vsyncadd (%p882_p6), %s240_s5, 4294966784  ;;  %vm280_vm0 = vcmask 261120   ;;  %v276_v0 = vld [vmem:[%s1023_s1] sm:$0xff]  ;;  %v277_v1 = vld [vmem:[%s1023_s1 + $0x8] sm:$0xff]  ;;  %vm401_vm5 = vcmask 130048   ;;  %v796_v31 = vmov 0   ;;  %v462_v55 = vlaneseq }
  0x3c   : > { %v278_v2 = vld [vmem:[%s1023_s1 + $0x10] sm:$0xff]  ;;  %v628_v3 = vpack.c.bf16 %v277_v1, %v276_v0  ;;  %v279_v4 = vld [vmem:[%s1023_s1 + $0x18] sm:$0xff]  ;;  %v272_v5 = vld [vmem:[%s243_s30] sm:$0xff]  ;;  %689 = vset.pattern.permute.xlu1 %v796_v31  ;;  %690 = vset.pattern.permute.xlu0 %v796_v31  ;;  %s414_s19 = sld [smem:[#allocation2]]  ;;  %vm480_vm10 = vcmask 1041409   ;;  %vm482_vm11 = vcmask 1042434  }
  0x3d   : > { %v274_v6 = vld [vmem:[%s243_s30 + $0x10] sm:$0xff]  ;;  %v632_v7 = vpack.c.bf16 %v279_v4, %v278_v2  ;;  %622 = vmatprep.mubr.msk.f32.mxu0 %vm280_vm0, %v272_v5  ;;  %v273_v8 = vld [vmem:[%s243_s30 + $0x8] sm:$0xff]  ;;  %v275_v9 = vld [vmem:[%s243_s30 + $0x18] sm:$0xff]  ;;  %v463_v56 = vand.u32 127, %v462_v55  ;;  %v465_v57 = vshrl.u32 %v462_v55, 7  ;;  %vm484_vm12 = vcmask 1043459  }
  0x3e   : > { %625 = vmatprep.mubr.msk.f32.mxu1 %vm280_vm0, %v274_v6  ;;  %629 = vmatprep.subr.bf16.mxu0 %v628_v3  ;;  %v599_v16 = vld [vmem:[%s1024_s2] ss:$0 sm:$0xff]  ;;  %vm487_vm13 = vcmask 60416   ;;  %s491_s24 = sld [smem:[#allocation3]]  ;;  %s602_s5 = sshll.u32 %s860_s3, 4  ;;  %vm506_vm14 = vcmask 24576  }
  0x3f   : > { %636 = vmatprep.subr.bf16.mxu1 %v628_v3  ;;  %631 = vmatpush3.bf16.msra.mxu0 %v628_v3  ;;  %v600_v32 = vld [vmem:[%s1026_s4] ss:$0 sm:$0xff]  ;;  %v466_v59 = vsub.s32 %v463_v56, %v465_v57  ;;  %s270_s30 = scalar_lea.vmem [#allocation7], %s943_s23  ;;  %s978_s22 = scalar_lea.hbm %s1028_s6, %s602_s5 }
  0x40   : > { %638 = vmatpush3.bf16.msra.mxu1 %v628_v3  ;;  %633 = vmatprep.subr.bf16.mxu0 %v632_v7  ;;  %s521_s18 = sshll.u32 %s270_s30, 4  ;;  %s509_s7 = scalar_lea.sflag [#allocation6], %s943_s23  ;;  %s980_s18 = int_to_ptr.vmem [resolvable:$true] %s521_s18 }
  0x41   : > { %637 = vmatprep.subr.bf16.mxu1 %v632_v7  ;;  %s725_s9 = scalar_lea.vmem %s980_s18, 16  ;;  %p1035_p11 = scmp.ne.s32.totalorder %s1032_s11, 0 }
  0x42   : > { %v415_v33 = vstv %s414_s19  ;;  %p726_p6 = scmp.ne.s32.totalorder %s980_s18, %s725_s9  ;;  %s797_s3 = smov [#allocation7]  }
  0x43   : > { %635 = vmatpush3.bf16.msra.mxu0 %v632_v7  ;;  %s729_s13 = sshll.u32 %s797_s3, 4  ;;  %s730_s13 = int_to_ptr.vmem [resolvable:$false] %s729_s13 }
  0x44   : > { %639 = vmatpush3.bf16.msra.mxu1 %v632_v7  ;;  %v492_v7 = vstv %s491_s24  ;;  %p727_p12 = pnand %p726_p6, %p1035_p11  ;;  %s731_s14 = scalar_lea.vmem %s730_s13, 32 }
  0x45   : > { %p732_p8 = scmp.lt.s32.totalorder %s980_s18, %s730_s13  ;;  %p733_p10 = scmp.lt.s32.totalorder %s731_s14, %s725_s9 }
  0x46   : > { %623 = vmatmul.mubr.msk.f32.vlgmr.msra.gmra.mrb[0].mxu0 %vm280_vm0, %v273_v8  ;;  %p728_p13 = pneg %p727_p12 }
  0x47   : > { %626 = vmatmul.mubr.msk.f32.vlgmr.msra.gmra.mrb[0].mxu1 %vm280_vm0, %v275_v9  ;;  %p734_p0 = por %p733_p10, %p732_p8 }
  0x49   : > { %p735_p2 = pnand %p734_p0, %p728_p13 }
 0x119   : > { %v624_v10 = vpop.f32.mrb[0].mxu0 }
 0x11a   : > { %v627_v11 = vpop.f32.mrb[0].mxu1  ;;  %vm379_vm1 = vcmp.gt.f32.partialorder %v624_v10, 0.0  ;;  %v383_v12 = vmul.f32 0.2, %v624_v10  ;;  %v359_v14 = vpop.f32.mrb[1].mxu0 }
 0x11b   : > { %vm381_vm2 = vcmp.gt.f32.partialorder %v627_v11, 0.0  ;;  %v385_v13 = vmul.f32 0.2, %v627_v11  ;;  %v369_v15 = vpop.f32.mrb[1].mxu1  ;;  %vm378_vm3 = vcmp.gt.f32.partialorder %v359_v14, 0.0 }
 0x11c   : > { %v382_v17 = vmul.f32 0.2, %v359_v14  ;;  %vm380_vm4 = vcmp.gt.f32.partialorder %v369_v15, 0.0  ;;  %v384_v18 = vmul.f32 0.2, %v369_v15  ;;  %v387_v19 = vsel %vm379_vm1, %v624_v10, %v383_v12 }
 0x11d   : > { %v389_v20 = vsel %vm381_vm2, %v627_v11, %v385_v13  ;;  %v398_v23 = vmul.f32 %v599_v16, %v387_v19 }
 0x11e   : > { %v386_v21 = vsel %vm378_vm3, %v359_v14, %v382_v17  ;;  %v388_v22 = vsel %vm380_vm4, %v369_v15, %v384_v18  ;;  %v400_v25 = vmul.f32 %v599_v16, %v389_v20 }
 0x11f   : > { %v399_v24 = vmul.f32 %v599_v16, %v388_v22  ;;  %v405_v26 = vsel %vm401_vm5, %v398_v23, 0.0  ;;  %v397_v27 = vmul.f32 %v599_v16, %v386_v21 }
 0x120   : > { %406 = vadd.xlane.f32.xlu0 %v405_v26  ;;  %v411_v29 = vsel %vm401_vm5, %v400_v25, 0.0 }
 0x121   : > { %v408_v28 = vsel %vm401_vm5, %v399_v24, 0.0  ;;  %v402_v30 = vsel %vm401_vm5, %v397_v27, 0.0 }
 0x122   : > { %409 = vadd.xlane.f32.xlu1 %v408_v28 }
 0x124   : > { %403 = vadd.xlane.f32.xlu0 %v402_v30 }
 0x126   : > { %412 = vadd.xlane.f32.xlu1 %v411_v29 }
 0x13a   : > { %439 = vbcast.lane.b32.xlu0 %v600_v32, 256 }
 0x1ad   : > { %v407_v34 = vpop.xlane.xlu0 %406 }
 0x1ae   : > { %v417_v35 = vadd.f32 %v415_v33, %v407_v34 }
 0x1af   : > { %v410_v36 = vpop.xlane.xlu1 %409 }
 0x1b0   : > { %v425_v37 = vmul.f32 0.2, %v417_v35  ;;  %vm421_vm6 = vcmp.gt.f32.partialorder %v417_v35, 0.0  ;;  %v418_v41 = vadd.f32 %v415_v33, %v410_v36 }
 0x1b1   : > { %v404_v38 = vpop.xlane.xlu0 %403 }
 0x1b2   : > { %v416_v39 = vadd.f32 %v415_v33, %v404_v38  ;;  %v429_v46 = vsel %vm421_vm6, %v417_v35, %v425_v37  ;;  %v426_v48 = vmul.f32 0.2, %v418_v41  ;;  %vm422_vm9 = vcmp.gt.f32.partialorder %v418_v41, 0.0 }
 0x1b3   : > { %v413_v40 = vpop.xlane.xlu1 %412 }
 0x1b4   : > { %v419_v42 = vadd.f32 %v415_v33, %v413_v40  ;;  %vm420_vm7 = vcmp.gt.f32.partialorder %v416_v39, 0.0  ;;  %v424_v43 = vmul.f32 0.2, %v416_v39  ;;  %v430_v53 = vsel %vm422_vm9, %v418_v41, %v426_v48 }
 0x1b5   : > { %v440_v45 = vpop.permute.xlu0 %439 }
 0x1b6   : > { %vm423_vm8 = vcmp.gt.f32.partialorder %v419_v42, 0.0  ;;  %v427_v44 = vmul.f32 0.2, %v419_v42  ;;  %v443_v47 = vmul.f32 %v440_v45, %v429_v46  ;;  %v428_v50 = vsel %vm420_vm7, %v416_v39, %v424_v43 }
 0x1b7   : > { %v442_v52 = vmul.f32 %v440_v45, %v428_v50  ;;  %v444_v54 = vmul.f32 %v440_v45, %v430_v53 }
 0x1b8   : > { %v431_v49 = vsel %vm423_vm8, %v419_v42, %v427_v44  ;;  %454 = vperm.xlu1 %689, %v443_v47  }
 0x1b9   : > { %v445_v51 = vmul.f32 %v440_v45, %v431_v49 }
 0x1bb   : > { %460 = vperm.xlu0 %690, %v445_v51  }
 0x1bc   : > { %451 = vperm.xlu1 %689, %v442_v52  }
 0x1c0   : > { %457 = vperm.xlu1 %689, %v444_v54  }
 0x237   : > { %v455_v58 = vpop.permute.xlu1 %454 }
 0x238   : > { %v471_v63 = vrot.slane %v455_v58, %v466_v59 }
 0x23a   : > { %v461_v62 = vpop.permute.xlu0 %460 }
 0x23b   : > { %v452_v60 = vpop.permute.xlu1 %451  ;;  %v479_v2 = vrot.slane %v461_v62, %v466_v59 }
 0x23c   : > { %v467_v61 = vrot.slane %v452_v60, %v466_v59 }
 0x23e   : > { %v481_v3 = vsel %vm480_vm10, %v471_v63, %v467_v61 }
 0x23f   : > { %v458_v0 = vpop.permute.xlu1 %457 }
 0x240   : > { %v475_v1 = vrot.slane %v458_v0, %v466_v59 }
 0x242   : > { %v483_v4 = vsel %vm482_vm11, %v475_v1, %v481_v3 }
 0x243   : > { %v485_v5 = vsel %vm484_vm12, %v479_v2, %v483_v4 }
 0x244   : > { %v488_v6 = vsel %vm487_vm13, %v485_v5, 0.0 }
 0x245   : > { %489 = vadd.xlane.f32.xlu1 %v488_v6 }
 0x2d2   : > { %v490_v8 = vpop.xlane.xlu1 %489 }
 0x2d3   : > { %v493_v9 = vadd.f32 %v492_v7, %v490_v8 }
 0x2d5   : > { %v601_v10 = vmul.f32 -1.442695, %v493_v9 }
 0x2d7   : > { %691 = vpow2.f32 %v601_v10 }
 0x2e1   : > { %v692_v11 = vpop.eup %691 }
 0x2e2   : > { %v497_v12 = vadd.f32 1.0, %v692_v11 }
 0x2e4   : > { %693 = vrcp.f32 %v497_v12 }
 0x2ee   : > { %v694_v13 = vpop.eup %693 }
 0x2ef   : > { %v504_v14 = vrot.slane %v694_v13, %v466_v59 }
 0x2f1   : > { %507 = vst.msk [vmem:[%s270_s30] sm:$0x1] %vm506_vm14, %v504_v14 }
 0x2f2   : > { %738 = shalt.err (!%p735_p2)
}
 0x2f3   : > { %s739_s23 = scalar_lea.hbm %s978_s22, 16  ;;  %s743_s16 = scalar_lea.hbm %s1028_s6, 32 }
 0x2f4   : > { %p740_p4 = scmp.ne.s32.totalorder %s978_s22, %s739_s23  ;;  %p744_p9 = scmp.lt.u32.totalorder %s978_s22, %s1028_s6 }
 0x2f5   : > { %p745_p1 = scmp.lt.u32.totalorder %s743_s16, %s739_s23  ;;  %p747_p6 = scmp.lt.u32.totalorder %s739_s23, %s978_s22 }
 0x2f6   : > { %p741_p5 = pnand %p740_p4, %p1035_p11 }
 0x2f7   : > { %p746_p3 = por %p745_p1, %p744_p9 }
 0x2f8   : > { %p742_p7 = pneg %p741_p5 }
 0x2f9   : > { %p748_p12 = por %p747_p6, %p746_p3 }
 0x2fb   : > { %p749_p13 = pnand %p748_p12, %p742_p7 }
 0x2fd   : > { %752 = shalt.err (!%p749_p13)
}
 0x2fe   : > { %642 = dma.vmem_to_hbm [thread:$0]  (%p1035_p11), %s980_s18, 16, %s978_s22, %s509_s7  }
 0x2ff PF: > { %s533_s24 = sand.u32 1, %s779_s25   ;;  %p1036_p8 = scmp.ne.s32.totalorder %s1033_s12, 0 }
 0x300   : > { %p1037_p10 = scmp.ge.s32.totalorder %s791_s28, 2  ;;  %s534_s5 = scalar_lea.sflag [#allocation6], %s533_s24 }
 0x302   : > { %p649_p0 = pnand %p1037_p10, %p1036_p8 }
 0x304   : > { %774 = dma.done.wait (!%p649_p0), %s534_s5, 16  }
 0x305   : > { %776 = vsyncadd (!%p649_p0), %s534_s5, 4294967280  ;;  %p21_p2 = scmp.ge.s32.totalorder %s864_s29, 4   ;;  %s1038_s25 = smov %s783_s26 }
 0x306   : > { %s1039_s26 = smov %s787_s27  ;;  %s1040_s27 = smov %s876_s8 }
 0x307   : > { %s1041_s28 = smov %s864_s29  ;;  %23 = sbr.rel (!%p21_p2) target bundleno = 8 (0x8), region = 89 }
 0x30e   :  { %538 = vsyncpa [#allocation5], 1 }
 0x30f   :  { %540 = vsyncpa [#allocation5 + $0x1], 1 }
 0x310   :  { %541 = vsyncpa [#allocation6], 1 }
 0x311   :  { %543 = vsyncpa [#allocation6 + $0x1], 1 }

</bundles_post_ra>
